<compile_context>
chip_gen: v5e
topology: v5e:2x2
jax: 0.10.0
libtpu: 0.0.40
codegen_flags: <defaults>
</compile_context>

<pallas_src>
import jax
import jax.numpy as jnp
from jax.experimental import pallas as pl
from jax.experimental.pallas import tpu as pltpu


def _round_up(x, m):
    return ((x + m - 1) // m) * m


def _cdiv(a, b):
    return -(-a // b)


def affine_kernel(p_ref, xt_ref, o_ref):
    """o[g, l] = w0*x[0,g,l] + w1*x[1,g,l] + w2*x[2,g,l] + b   (pure VPU, dense tiles).

    p_ref : SMEM (4,)          f32     -> [w_eff0, w_eff1, w_eff2, b_eff]
    xt_ref: VMEM (3, tbg, 128) x.dtype -> x transposed; batch on (sublane, lane)
    o_ref : VMEM (tbg, 128)    x.dtype -> dense output tile
    """
    x0 = xt_ref[0].astype(jnp.float32)
    x1 = xt_ref[1].astype(jnp.float32)
    x2 = xt_ref[2].astype(jnp.float32)
    acc = p_ref[0] * x0 + p_ref[1] * x1 + p_ref[2] * x2 + p_ref[3]
    o_ref[...] = acc.astype(o_ref.dtype)


def _choose_tiling(batch, max_groups_per_step, split_groups_threshold=1024):
    """Pick (tbg, groups_pad, n_steps); one group = 128 batch elements (one vreg row)."""
    groups = _cdiv(batch, 128)
    n_steps = _cdiv(groups, max_groups_per_step)
    # Large batches: keep >= 2 steps so both v7x TensorCores get work and the
    # BlockSpec pipeline actually overlaps DMA with compute.
    if groups >= split_groups_threshold:
        n_steps = max(n_steps, 2)
    if n_steps == 1:
        tbg = groups                                   # single full block
    else:
        tbg = _round_up(_cdiv(groups, n_steps), 8)     # sublane-dense multi-step tiles
    groups_pad = _round_up(max(groups, 1), max(tbg, 1))
    return tbg, groups_pad, groups_pad // tbg


def neural_net_forward(x, params, *, max_groups_per_step=4096):
    """Forward pass of NeuralNet: Linear(3,4) -> Linear(4,4) -> Linear(4,1).

    params = (w1, b1, w2, b2, w3, b3); weights stored [in, out] (transpose of
    torch.nn.Linear.weight), biases [1, out].  Returns [batch, 1] in x.dtype.
    """
    w1, b1, w2, b2, w3, b3 = params
    # Affine collapse (valid ONLY because the module has no activations between layers).
    w_eff = w1 @ w2 @ w3                    # [3, 1]
    b_eff = (b1 @ w2 + b2) @ w3 + b3        # [1, 1]
    p = jnp.concatenate([w_eff[:, 0], b_eff[0]]).astype(jnp.float32)  # (4,) SMEM scalars

    batch, feat = x.shape
    assert feat == 3, "NeuralNet expects 3 input features"
    tbg, groups_pad, n_steps = _choose_tiling(batch, max_groups_per_step)
    lanes_pad = groups_pad * 128

    # Single layout pass: pad batch, put batch on (sublane, lane).  The reshape after the
    # transpose is contiguous (free); XLA fuses pad+transpose into one copy.
    x_t = jnp.pad(x, ((0, lanes_pad - batch), (0, 0))).T.reshape(3, groups_pad, 128)

    in_bytes = jnp.dtype(x.dtype).itemsize
    bytes_accessed = lanes_pad * 4 * in_bytes          # 3 inputs + 1 output per element

    out3 = pl.pallas_call(
        affine_kernel,
        out_shape=jax.ShapeDtypeStruct((groups_pad, 128), x.dtype),
        grid=(n_steps,),
        in_specs=[
            pl.BlockSpec(memory_space=pltpu.MemorySpace.SMEM),     # 4 effective scalars
            pl.BlockSpec((3, tbg, 128), lambda i: (0, i, 0)),      # dense x^T tile
        ],
        out_specs=pl.BlockSpec((tbg, 128), lambda i: (i, 0)),      # dense output tile
        compiler_params=pltpu.CompilerParams(
            dimension_semantics=("parallel",),        # batch grid splits across TCs (v7x)
            vmem_limit_bytes=48 * 1024 * 1024,        # explicit; actual need <= ~17 MiB
        ),
        cost_estimate=pl.CostEstimate(
            flops=7 * lanes_pad, transcendentals=0, bytes_accessed=bytes_accessed),
    )(p, x_t)

    return out3.reshape(lanes_pad)[:batch].reshape(batch, 1)


def init_params(key):
    # Deterministic init mimicking nn.Linear's U(-1/sqrt(fan_in), 1/sqrt(fan_in)).
    def linear_init(k, fan_in, fan_out):
        kw, kb = jax.random.split(k)
        bound = 1.0 / jnp.sqrt(fan_in)
        # stored as [in, out] so forward computes x @ W + b
        w = jax.random.uniform(kw, (fan_in, fan_out), jnp.float32, -bound, bound)
        b = jax.random.uniform(kb, (1, fan_out), jnp.float32, -bound, bound)
        return w, b

    k1, k2, k3 = jax.random.split(key, 3)
    w1, b1 = linear_init(k1, 3, 4)
    w2, b2 = linear_init(k2, 4, 4)
    w3, b3 = linear_init(k3, 4, 1)
    return (w1, b1, w2, b2, w3, b3)


if __name__ == "__main__":
    key = jax.random.PRNGKey(0)
    k_params, k_x1, k_x2 = jax.random.split(key, 3)
    params = init_params(k_params)
    w1, b1, w2, b2, w3, b3 = params

    def ref_fn(xv):
        # Layer-by-layer pure-JAX reference (exact module semantics: 3 linears, no activation).
        return ((xv @ w1 + b1) @ w2 + b2) @ w3 + b3

    # Small, module-natural shape.
    batch = 8
    x = jax.random.normal(k_x1, (batch, 3), jnp.float32)
    out = jax.block_until_ready(neural_net_forward(x, params))
    assert out.shape == (batch, 1)
    assert jnp.allclose(out, ref_fn(x), atol=1e-5, rtol=1e-5)

    # Exercise the multi-step grid + padded-tail path (tiny tiles only for coverage).
    batch2 = 2048 + 37
    x2 = jax.random.normal(k_x2, (batch2, 3), jnp.float32)
    out2 = jax.block_until_ready(neural_net_forward(x2, params, max_groups_per_step=8))
    assert out2.shape == (batch2, 1)
    assert jnp.allclose(out2, ref_fn(x2), atol=1e-5, rtol=1e-5)

    print("KERNEL_OK")
</pallas_src>

<mosaic_0001>
module attributes {stable_mosaic.version = 11 : i64} {
  func.func @affine_kernel(%arg0: i32, %arg1: memref<4xf32, #tpu.memory_space<smem>>, %arg2: memref<3x1x128xf32, #tpu.memory_space<vmem>>, %arg3: memref<1x128xf32, #tpu.memory_space<vmem>>) attributes {dimension_semantics = [#tpu.dimension_semantics<parallel>], iteration_bounds = array<i64: 1>, scalar_prefetch = 0 : i64, scratch_operands = 0 : i64, tpu.core_type = #tpu.core_type<tc>, window_params = [{transform_indices = @transform_0, window_bounds = array<i64: 4>}, {transform_indices = @transform_1, window_bounds = array<i64: 3, 1, 128>}, {transform_indices = @transform_2, window_bounds = array<i64: 1, 128>}]} {
    %c0 = arith.constant 0 : index
    %c0_0 = arith.constant 0 : index
    %c0_1 = arith.constant 0 : index
    %0 = vector.load %arg2[%c0, %c0_0, %c0_1] : memref<3x1x128xf32, #tpu.memory_space<vmem>>, vector<1x1x128xf32>
    %1 = vector.shape_cast %0 : vector<1x1x128xf32> to vector<1x128xf32>
    %c1 = arith.constant 1 : index
    %c0_2 = arith.constant 0 : index
    %c0_3 = arith.constant 0 : index
    %2 = vector.load %arg2[%c1, %c0_2, %c0_3] : memref<3x1x128xf32, #tpu.memory_space<vmem>>, vector<1x1x128xf32>
    %3 = vector.shape_cast %2 : vector<1x1x128xf32> to vector<1x128xf32>
    %c2 = arith.constant 2 : index
    %c0_4 = arith.constant 0 : index
    %c0_5 = arith.constant 0 : index
    %4 = vector.load %arg2[%c2, %c0_4, %c0_5] : memref<3x1x128xf32, #tpu.memory_space<vmem>>, vector<1x1x128xf32>
    %5 = vector.shape_cast %4 : vector<1x1x128xf32> to vector<1x128xf32>
    %c0_6 = arith.constant 0 : index
    %6 = memref.load %arg1[%c0_6] : memref<4xf32, #tpu.memory_space<smem>>
    %7 = vector.broadcast %6 : f32 to vector<1x128xf32>
    %8 = arith.mulf %7, %1 : vector<1x128xf32>
    %c1_7 = arith.constant 1 : index
    %9 = memref.load %arg1[%c1_7] : memref<4xf32, #tpu.memory_space<smem>>
    %10 = vector.broadcast %9 : f32 to vector<1x128xf32>
    %11 = arith.mulf %10, %3 : vector<1x128xf32>
    %12 = arith.addf %8, %11 : vector<1x128xf32>
    %c2_8 = arith.constant 2 : index
    %13 = memref.load %arg1[%c2_8] : memref<4xf32, #tpu.memory_space<smem>>
    %14 = vector.broadcast %13 : f32 to vector<1x128xf32>
    %15 = arith.mulf %14, %5 : vector<1x128xf32>
    %16 = arith.addf %12, %15 : vector<1x128xf32>
    %c3 = arith.constant 3 : index
    %17 = memref.load %arg1[%c3] : memref<4xf32, #tpu.memory_space<smem>>
    %18 = vector.broadcast %17 : f32 to vector<1x128xf32>
    %19 = arith.addf %16, %18 : vector<1x128xf32>
    %c0_9 = arith.constant 0 : index
    %c0_10 = arith.constant 0 : index
    %20 = vector.load %arg3[%c0_9, %c0_10] : memref<1x128xf32, #tpu.memory_space<vmem>>, vector<1x128xf32>
    tpu.vector_store %arg3[%c0_9, %c0_10], %19 {strides = array<i32>} : memref<1x128xf32, #tpu.memory_space<vmem>>, vector<1x128xf32>,
    return
  }
  func.func @transform_0(%arg0: i32) -> i32 {
    %c0_i32 = arith.constant 0 : i32
    %c0_i32_0 = arith.constant 0 : i32
    return %c0_i32 : i32
  }
  func.func @transform_1(%arg0: i32) -> (i32, i32, i32) {
    %c0_i32 = arith.constant 0 : i32
    %c0_i32_0 = arith.constant 0 : i32
    %c0_i32_1 = arith.constant 0 : i32
    return %c0_i32, %arg0, %c0_i32_0 : i32, i32, i32
  }
  func.func @transform_2(%arg0: i32) -> (i32, i32) {
    %c0_i32 = arith.constant 0 : i32
    %c0_i32_0 = arith.constant 0 : i32
    return %arg0, %c0_i32 : i32, i32
  }
}

</mosaic_0001>

<bundles_post_ra>
// kernel: tpu_custom_call.1
= control target key start
LH: loop header
LB: loop body
LE: loop exit
PB: predicated region body
PF: predicated region fallthrough
CT: control target
= control target key end

     0   :  { %7 = vsyncpa [#allocation5], 0  ;;  %s182_s0 = inlined_call_operand.hbm [shape: f32[4], index: 0, kind: input, shape index: {}]   ;;  %s183_s1 = inlined_call_operand.hbm [shape: f32[3,1,128], index: 1, kind: input, shape index: {}]   ;;  %s184_s2 = inlined_call_operand.hbm [shape: f32[1,128], index: 2, kind: output, shape index: {}]  }
   0x1   :  { %8 = vsyncpa [#allocation3], 0 }
   0x2   :  { %9 = vsyncpa [#allocation4], 0  ;;  %s15_s11 = sshll.u32 %s182_s0, 4  ;;  %s23_s14 = sshll.u32 %s183_s1, 4  ;;  %s16_s11 = int_to_ptr.hbm [resolvable:$true] %s15_s11  ;;  %s24_s14 = int_to_ptr.hbm [resolvable:$true] %s23_s14 }
   0x3   :  { %s153_s15 = smov [#allocation2]   ;;  %s154_s16 = smov [#allocation6]  }
   0x4   :  { %18 = dma.hbm_to_smem %s16_s11, 16, %s153_s15, [#allocation5]  }
   0x5   :  { %s25_s17 = sshll.u32 %s154_s16, 4  ;;  %s155_s18 = smov 16   ;;  %s26_s17 = int_to_ptr.vmem [resolvable:$true] %s25_s17 }
   0x6   :  { %s156_s19 = smov 1  }
   0x7   :  { %31 = dma.hbm_to_vmem [thread:$0]  %s24_s14, 48, %s26_s17, [#allocation3], %s155_s18, %s155_s18, %s156_s19  }
   0x8   :  { %147 = dma.done.wait [#allocation5], 16  }
   0x9   :  { %148 = vsyncadd [#allocation5], 4294967280 }
   0xa   :  { %149 = dma.done.wait [#allocation3], 48  }
   0xb   :  { %150 = vsyncadd [#allocation3], 4294967248 }
   0xc   :  { %40 = sfence }
   0xd   :  { %s46_s0 = sld [smem:[#allocation2]]  ;;  %v41_v0 = vld [vmem:[#allocation6] sm:$0x1]  ;;  %v43_v1 = vld [vmem:[#allocation6 + $0x1] sm:$0x1]  ;;  %s157_s1 = smov [#allocation7]  }
   0xe   :  { %s79_s20 = sld [smem:[#allocation2 + $0x1]]  ;;  %v45_v2 = vld [vmem:[#allocation6 + $0x2] sm:$0x1]  ;;  %s66_s23 = sshll.u32 %s157_s1, 4  ;;  %s67_s23 = int_to_ptr.vmem [resolvable:$true] %s66_s23 }
   0xf   :  { %s80_s21 = sld [smem:[#allocation2 + $0x2]]  ;;  %s68_s26 = sshll.u32 %s184_s2, 4  ;;  %s69_s26 = int_to_ptr.hbm [resolvable:$true] %s68_s26 }
  0x10   :  { %s81_s22 = sld [smem:[#allocation2 + $0x3]] }
  0x13   :  { %v47_v3 = vstv %s46_s0 }
  0x14   :  { %v48_v4 = vmul.f32 %v47_v3, %v41_v0  ;;  %v50_v5 = vstv %s79_s20 }
  0x15   :  { %v51_v6 = vmul.f32 %v50_v5, %v43_v1  ;;  %v54_v7 = vstv %s80_s21 }
  0x16   :  { %v55_v8 = vmul.f32 %v54_v7, %v45_v2  ;;  %v58_v10 = vstv %s81_s22 }
  0x17   :  { %v52_v9 = vadd.f32 %v51_v6, %v48_v4 }
  0x19   :  { %v56_v11 = vadd.f32 %v55_v8, %v52_v9 }
  0x1b   :  { %v59_v12 = vadd.f32 %v58_v10, %v56_v11 }
  0x1d   :  { %60 = vst [vmem:[#allocation7] sm:$0x1] %v59_v12 }
  0x1e   :  { %71 = dma.vmem_to_hbm [thread:$0]  %s67_s23, 16, %s69_s26, [#allocation4]  }
  0x1f   :  { %151 = dma.done.wait [#allocation4], 16  }
  0x20   :  { %152 = vsyncadd [#allocation4], 4294967280 }
  0x21   :  { %76 = vsyncpa [#allocation3], 1 }
  0x22   :  { %77 = vsyncpa [#allocation4], 1 }
  0x23   :  { %78 = vsyncpa [#allocation5], 1 }

</bundles_post_ra>
